<compile_context>
chip_gen: v7x
topology: tpu7x:2x2x1
jax: 0.10.0
libtpu: 0.0.40
codegen_flags: <defaults>
</compile_context>

<pallas_src>
import math
from functools import partial

import jax
import jax.numpy as jnp
from jax import lax
from jax.experimental import pallas as pl
from jax.experimental.pallas import tpu as pltpu


def _round_up(x, m):
    return ((x + m - 1) // m) * m


_BASE_SHIFT = 8                      # nonzero base roll shift; max shift = 8 + 63 < 128
_VMEM_LIMIT = 32 * 1024 * 1024       # scoped-VMEM request (need ~<= 12 MiB)


def _choose_tiles(n, heads, out_itemsize):
    # Row tile: <= 64 so every roll shift stays < 128 lanes; for n < 64 the
    # block is the full dim (always a legal block shape).
    row_tile = min(n, 64)
    # Column tile: full n when small (full-dim last block dim is always legal);
    # otherwise a multiple of 128 from a VMEM byte budget so the double-buffered
    # output block stays well inside the scoped-VMEM limit on all generations.
    if n <= 1024:
        col_tile = n
    elif n >= 2048 and 2 * heads * row_tile * 2048 * out_itemsize <= (12 << 20):
        col_tile = 2048
    else:
        col_tile = 1024
    return row_tile, col_tile


def _dpb_fused_kernel(w0_ref, b0_ref, w1_ref, b1_ref, w2_ref, b2_ref, out_ref,
                      *, heads, row_tile, col_tile, p_pad, log_distance):
    i0 = pl.program_id(0) * row_tile
    j0 = pl.program_id(1) * col_tile
    off = i0 - j0

    # Wrapped lane layout: lane m holds MLP input position
    #     pos_m = off + (RT-1) - ((m + BASE + RT - 1) mod P)
    # so that a lane roll by (BASE + r) recovers output row r of this tile:
    #     roll(h, BASE + r)[jj] = h[(jj - BASE - r) mod P] = MLP(off + r - jj).
    k = lax.broadcasted_iota(jnp.int32, (1, p_pad), 1)
    km = k + (_BASE_SHIFT + row_tile - 1)
    km = jnp.where(km >= p_pad, km - p_pad, km)                # mod P (arg < 2P)
    pos = (off + (row_tile - 1) - km).astype(jnp.float32)      # (1, P)
    if log_distance:
        pos = jnp.sign(pos) * jnp.log(jnp.abs(pos) + 1.0)

    # MLP in (features, positions) layout -- positions lane-dense.
    h = w0_ref[...] * pos + b0_ref[...]                        # (dim, P): K=1 on VPU
    h = h * jax.nn.sigmoid(h)                                  # SiLU
    h = jnp.dot(w1_ref[...], h, preferred_element_type=jnp.float32,
                precision=lax.Precision.HIGHEST) + b1_ref[...]
    h = h * jax.nn.sigmoid(h)
    h = jnp.dot(w2_ref[...], h, preferred_element_type=jnp.float32,
                precision=lax.Precision.HIGHEST) + b2_ref[...]  # (heads, P)

    # Fused Toeplitz expansion + 'i j h -> h i j'.  Per head and per 8-row
    # group: one strided lane roll (shift grows by 1 per sublane) + one dense
    # (<=8, col_tile) store.  No unaligned lane slices, no per-row masked stores.
    for head in range(heads):
        hb = jnp.broadcast_to(h[head:head + 1, :], (8, p_pad))
        r0 = 0
        while r0 < row_tile:
            rows = min(8, row_tile - r0)
            rolled = pltpu.roll(hb, _BASE_SHIFT + r0, 1, stride=1, stride_axis=0)
            out_ref[head, r0:r0 + rows, :] = (
                rolled[:rows, :col_tile].astype(out_ref.dtype))
            r0 += 8


def init_params(key, dim, heads):
    """Deterministic PyTorch-style Linear init: U(-1/sqrt(fan_in), .), torch (out,in) layout."""
    ks = jax.random.split(key, 6)

    def lin(kw, kb, fan_in, fan_out):
        bound = 1.0 / math.sqrt(fan_in)
        w = jax.random.uniform(kw, (fan_out, fan_in), jnp.float32, -bound, bound)
        b = jax.random.uniform(kb, (fan_out,), jnp.float32, -bound, bound)
        return w, b

    w0, b0 = lin(ks[0], ks[1], 1, dim)
    w1, b1 = lin(ks[2], ks[3], dim, dim)
    w2, b2 = lin(ks[4], ks[5], dim, heads)
    return dict(w0=w0, b0=b0, w1=w1, b1=b1, w2=w2, b2=b2)


def dynamic_position_bias(n, params, *, log_distance=False, out_dtype=jnp.float32):
    heads, dim = params["w2"].shape
    out_itemsize = jnp.dtype(out_dtype).itemsize
    row_tile, col_tile = _choose_tiles(n, heads, out_itemsize)
    p_pad = _round_up(col_tile + row_tile - 1, 128)   # lane extent of the MLP per tile

    # Column-vector weights/biases for the (features, positions) layout.
    w0 = params["w0"].reshape(dim, 1)
    b0 = params["b0"].reshape(dim, 1)
    w1 = params["w1"]                                 # (dim, dim), torch (out, in)
    b1 = params["b1"].reshape(dim, 1)
    w2 = params["w2"]                                 # (heads, dim)
    b2 = params["b2"].reshape(heads, 1)

    def resident(shape):                              # full-array VMEM block, fixed index
        nd = len(shape)
        return pl.BlockSpec(shape, lambda i, j, _nd=nd: (0,) * _nd)

    kernel = partial(_dpb_fused_kernel, heads=heads, row_tile=row_tile,
                     col_tile=col_tile, p_pad=p_pad, log_distance=log_distance)

    length = 2 * n - 1
    cost = pl.CostEstimate(
        flops=2 * (dim + dim * dim + dim * heads) * length + heads * n * n,
        transcendentals=2 * dim * length,
        bytes_accessed=heads * n * n * out_itemsize)

    return pl.pallas_call(
        kernel,
        out_shape=jax.ShapeDtypeStruct((heads, n, n), out_dtype),
        grid=(pl.cdiv(n, row_tile), pl.cdiv(n, col_tile)),
        in_specs=[resident(w0.shape), resident(b0.shape), resident(w1.shape),
                  resident(b1.shape), resident(w2.shape), resident(b2.shape)],
        out_specs=pl.BlockSpec((heads, row_tile, col_tile),
                               lambda i, j: (0, i, j)),
        compiler_params=pltpu.CompilerParams(
            dimension_semantics=("parallel", "parallel"),
            vmem_limit_bytes=_VMEM_LIMIT),
        cost_estimate=cost,
    )(w0, b0, w1, b1, w2, b2)


def dynamic_position_bias_ref(n, params, *, log_distance=False):
    """Pure-JAX reference mirroring the PyTorch forward (exact f32 matmuls)."""
    hp = lax.Precision.HIGHEST
    pos = jnp.arange(-n + 1, n, dtype=jnp.float32)[:, None]
    if log_distance:
        pos = jnp.sign(pos) * jnp.log(jnp.abs(pos) + 1.0)
    h = jnp.dot(pos, params["w0"].T, precision=hp) + params["b0"]
    h = h * jax.nn.sigmoid(h)
    h = jnp.dot(h, params["w1"].T, precision=hp) + params["b1"]
    h = h * jax.nn.sigmoid(h)
    out = jnp.dot(h, params["w2"].T, precision=hp) + params["b2"]   # (2n-1, heads)
    i = jnp.arange(n)[:, None]
    j = jnp.arange(n)[None, :]
    return jnp.transpose(out[i - j + n - 1], (2, 0, 1))             # (heads, n, n)


if __name__ == "__main__":
    dim, heads = 32, 8      # depth=2, norm=False
    key = jax.random.PRNGKey(0)
    params = init_params(key, dim, heads)

    # Small configs exercising: tiny n, n % 8 != 0 (partial-sublane tail),
    # n > 64 with ragged row tiles / n % 128 != 0, and the log_distance branch.
    cases = [(8, False), (20, False), (72, False), (16, True)]
    for n, log_distance in cases:
        bias = jax.block_until_ready(
            dynamic_position_bias(n, params, log_distance=log_distance))
        ref = dynamic_position_bias_ref(n, params, log_distance=log_distance)
        assert bias.shape == (heads, n, n), bias.shape
        err = float(jnp.max(jnp.abs(bias - ref)))
        assert jnp.allclose(bias, ref, atol=1e-4, rtol=1e-4), (
            f"mismatch vs reference at n={n}, log_distance={log_distance}: {err}")

    print("KERNEL_OK")
</pallas_src>

<mosaic_0001>
module attributes {stable_mosaic.version = 11 : i64} {
  func.func @_dpb_fused_kernel(%arg0: i32, %arg1: i32, %arg2: memref<32x1xf32, #tpu.memory_space<vmem>>, %arg3: memref<32x1xf32, #tpu.memory_space<vmem>>, %arg4: memref<32x32xf32, #tpu.memory_space<vmem>>, %arg5: memref<32x1xf32, #tpu.memory_space<vmem>>, %arg6: memref<8x32xf32, #tpu.memory_space<vmem>>, %arg7: memref<8x1xf32, #tpu.memory_space<vmem>>, %arg8: memref<8x8x8xf32, #tpu.memory_space<vmem>>) attributes {dimension_semantics = [#tpu.dimension_semantics<parallel>, #tpu.dimension_semantics<parallel>], iteration_bounds = array<i64: 1, 1>, scalar_prefetch = 0 : i64, scratch_operands = 0 : i64, tpu.core_type = #tpu.core_type<tc>, window_params = [{pipeline_mode = #tpu.pipeline_mode<synchronous>, transform_indices = @transform_0, window_bounds = array<i64: 32, 1>}, {pipeline_mode = #tpu.pipeline_mode<synchronous>, transform_indices = @transform_1, window_bounds = array<i64: 32, 1>}, {pipeline_mode = #tpu.pipeline_mode<synchronous>, transform_indices = @transform_2, window_bounds = array<i64: 32, 32>}, {pipeline_mode = #tpu.pipeline_mode<synchronous>, transform_indices = @transform_3, window_bounds = array<i64: 32, 1>}, {pipeline_mode = #tpu.pipeline_mode<synchronous>, transform_indices = @transform_4, window_bounds = array<i64: 8, 32>}, {pipeline_mode = #tpu.pipeline_mode<synchronous>, transform_indices = @transform_5, window_bounds = array<i64: 8, 1>}, {transform_indices = @transform_6, window_bounds = array<i64: 8, 8, 8>}]} {
    %c8_i32 = arith.constant 8 : i32
    %0 = arith.muli %arg0, %c8_i32 : i32
    %c8_i32_0 = arith.constant 8 : i32
    %1 = arith.muli %arg1, %c8_i32_0 : i32
    %2 = arith.subi %0, %1 : i32
    %3 = tpu.iota {dimensions = array<i32: 1>} : vector<1x128xi32>
    %c15_i32 = arith.constant 15 : i32
    %4 = vector.broadcast %c15_i32 : i32 to vector<1x128xi32>
    %5 = arith.addi %3, %4 : vector<1x128xi32>
    %c128_i32 = arith.constant 128 : i32
    %6 = vector.broadcast %c128_i32 : i32 to vector<1x128xi32>
    %7 = arith.cmpi sge, %5, %6 : vector<1x128xi32>
    %c128_i32_1 = arith.constant 128 : i32
    %8 = vector.broadcast %c128_i32_1 : i32 to vector<1x128xi32>
    %9 = arith.subi %5, %8 : vector<1x128xi32>
    %10 = arith.select %7, %9, %5 : vector<1x128xi1>, vector<1x128xi32>
    %c7_i32 = arith.constant 7 : i32
    %11 = arith.addi %2, %c7_i32 : i32
    %12 = vector.broadcast %11 : i32 to vector<1x128xi32>
    %13 = arith.subi %12, %10 : vector<1x128xi32>
    %14 = arith.sitofp %13 : vector<1x128xi32> to vector<1x128xf32>
    %c0 = arith.constant 0 : index
    %c0_2 = arith.constant 0 : index
    %15 = vector.load %arg2[%c0, %c0_2] : memref<32x1xf32, #tpu.memory_space<vmem>>, vector<32x1xf32>
    %16 = vector.broadcast %15 : vector<32x1xf32> to vector<32x128xf32>
    %17 = vector.broadcast %14 : vector<1x128xf32> to vector<32x128xf32>
    %18 = arith.mulf %16, %17 : vector<32x128xf32>
    %c0_3 = arith.constant 0 : index
    %c0_4 = arith.constant 0 : index
    %19 = vector.load %arg3[%c0_3, %c0_4] : memref<32x1xf32, #tpu.memory_space<vmem>>, vector<32x1xf32>
    %20 = vector.broadcast %19 : vector<32x1xf32> to vector<32x128xf32>
    %21 = arith.addf %18, %20 : vector<32x128xf32>
    %22 = arith.negf %21 : vector<32x128xf32>
    %23 = math.exp %22 : vector<32x128xf32>
    %cst = arith.constant 1.000000e+00 : f32
    %24 = vector.broadcast %cst : f32 to vector<32x128xf32>
    %25 = arith.addf %24, %23 : vector<32x128xf32>
    %26 = arith.divf %24, %25 : vector<32x128xf32>
    %27 = arith.mulf %21, %26 : vector<32x128xf32>
    %c0_5 = arith.constant 0 : index
    %c0_6 = arith.constant 0 : index
    %28 = vector.load %arg4[%c0_5, %c0_6] : memref<32x32xf32, #tpu.memory_space<vmem>>, vector<32x32xf32>
    %cst_7 = arith.constant dense<0.000000e+00> : vector<32x128xf32>
    %29 = tpu.matmul %28, %27, %cst_7 {dimension_numbers = #tpu.dot_dimension_numbers<[1], [0], [0], [1], [0, 0, 1, 1], [], []>, precision = #tpu.contract_precision<fp32>} : vector<32x32xf32>, vector<32x128xf32>, vector<32x128xf32> -> vector<32x128xf32>
    %c0_8 = arith.constant 0 : index
    %c0_9 = arith.constant 0 : index
    %30 = vector.load %arg5[%c0_8, %c0_9] : memref<32x1xf32, #tpu.memory_space<vmem>>, vector<32x1xf32>
    %31 = vector.broadcast %30 : vector<32x1xf32> to vector<32x128xf32>
    %32 = arith.addf %29, %31 : vector<32x128xf32>
    %33 = arith.negf %32 : vector<32x128xf32>
    %34 = math.exp %33 : vector<32x128xf32>
    %cst_10 = arith.constant 1.000000e+00 : f32
    %35 = vector.broadcast %cst_10 : f32 to vector<32x128xf32>
    %36 = arith.addf %35, %34 : vector<32x128xf32>
    %37 = arith.divf %35, %36 : vector<32x128xf32>
    %38 = arith.mulf %32, %37 : vector<32x128xf32>
    %c0_11 = arith.constant 0 : index
    %c0_12 = arith.constant 0 : index
    %39 = vector.load %arg6[%c0_11, %c0_12] : memref<8x32xf32, #tpu.memory_space<vmem>>, vector<8x32xf32>
    %cst_13 = arith.constant dense<0.000000e+00> : vector<8x128xf32>
    %40 = tpu.matmul %39, %38, %cst_13 {dimension_numbers = #tpu.dot_dimension_numbers<[1], [0], [0], [1], [0, 0, 1, 1], [], []>, precision = #tpu.contract_precision<fp32>} : vector<8x32xf32>, vector<32x128xf32>, vector<8x128xf32> -> vector<8x128xf32>
    %c0_14 = arith.constant 0 : index
    %c0_15 = arith.constant 0 : index
    %41 = vector.load %arg7[%c0_14, %c0_15] : memref<8x1xf32, #tpu.memory_space<vmem>>, vector<8x1xf32>
    %42 = vector.broadcast %41 : vector<8x1xf32> to vector<8x128xf32>
    %43 = arith.addf %40, %42 : vector<8x128xf32>
    %44 = vector.extract_strided_slice %43 {offsets = [0, 0], sizes = [1, 128], strides = [1, 1]} : vector<8x128xf32> to vector<1x128xf32>
    %45 = vector.shape_cast %44 : vector<1x128xf32> to vector<1x128xf32>
    %46 = vector.broadcast %45 : vector<1x128xf32> to vector<8x128xf32>
    %c8_i32_16 = arith.constant 8 : i32
    %47 = tpu.dynamic_rotate %46 by %c8_i32_16 dim 1 {stride = 1 : si32, stride_dimension = 0 : si32} : vector<8x128xf32>, i32 -> vector<8x128xf32>
    %48 = vector.extract_strided_slice %47 {offsets = [0, 0], sizes = [8, 8], strides = [1, 1]} : vector<8x128xf32> to vector<8x8xf32>
    %c0_17 = arith.constant 0 : index
    %c0_18 = arith.constant 0 : index
    %c0_19 = arith.constant 0 : index
    %49 = vector.load %arg8[%c0_17, %c0_18, %c0_19] : memref<8x8x8xf32, #tpu.memory_space<vmem>>, vector<1x8x8xf32>
    %50 = vector.shape_cast %49 : vector<1x8x8xf32> to vector<8x8xf32>
    %51 = vector.shape_cast %48 : vector<8x8xf32> to vector<1x8x8xf32>
    tpu.vector_store %arg8[%c0_17, %c0_18, %c0_19], %51 {strides = array<i32>} : memref<8x8x8xf32, #tpu.memory_space<vmem>>, vector<1x8x8xf32>,
    %52 = vector.extract_strided_slice %43 {offsets = [1, 0], sizes = [1, 128], strides = [1, 1]} : vector<8x128xf32> to vector<1x128xf32>
    %53 = vector.shape_cast %52 : vector<1x128xf32> to vector<1x128xf32>
    %54 = vector.broadcast %53 : vector<1x128xf32> to vector<8x128xf32>
    %c8_i32_20 = arith.constant 8 : i32
    %55 = tpu.dynamic_rotate %54 by %c8_i32_20 dim 1 {stride = 1 : si32, stride_dimension = 0 : si32} : vector<8x128xf32>, i32 -> vector<8x128xf32>
    %56 = vector.extract_strided_slice %55 {offsets = [0, 0], sizes = [8, 8], strides = [1, 1]} : vector<8x128xf32> to vector<8x8xf32>
    %c1 = arith.constant 1 : index
    %c0_21 = arith.constant 0 : index
    %c0_22 = arith.constant 0 : index
    %57 = vector.load %arg8[%c1, %c0_21, %c0_22] : memref<8x8x8xf32, #tpu.memory_space<vmem>>, vector<1x8x8xf32>
    %58 = vector.shape_cast %57 : vector<1x8x8xf32> to vector<8x8xf32>
    %59 = vector.shape_cast %56 : vector<8x8xf32> to vector<1x8x8xf32>
    tpu.vector_store %arg8[%c1, %c0_21, %c0_22], %59 {strides = array<i32>} : memref<8x8x8xf32, #tpu.memory_space<vmem>>, vector<1x8x8xf32>,
    %60 = vector.extract_strided_slice %43 {offsets = [2, 0], sizes = [1, 128], strides = [1, 1]} : vector<8x128xf32> to vector<1x128xf32>
    %61 = vector.shape_cast %60 : vector<1x128xf32> to vector<1x128xf32>
    %62 = vector.broadcast %61 : vector<1x128xf32> to vector<8x128xf32>
    %c8_i32_23 = arith.constant 8 : i32
    %63 = tpu.dynamic_rotate %62 by %c8_i32_23 dim 1 {stride = 1 : si32, stride_dimension = 0 : si32} : vector<8x128xf32>, i32 -> vector<8x128xf32>
    %64 = vector.extract_strided_slice %63 {offsets = [0, 0], sizes = [8, 8], strides = [1, 1]} : vector<8x128xf32> to vector<8x8xf32>
    %c2 = arith.constant 2 : index
    %c0_24 = arith.constant 0 : index
    %c0_25 = arith.constant 0 : index
    %65 = vector.load %arg8[%c2, %c0_24, %c0_25] : memref<8x8x8xf32, #tpu.memory_space<vmem>>, vector<1x8x8xf32>
    %66 = vector.shape_cast %65 : vector<1x8x8xf32> to vector<8x8xf32>
    %67 = vector.shape_cast %64 : vector<8x8xf32> to vector<1x8x8xf32>
    tpu.vector_store %arg8[%c2, %c0_24, %c0_25], %67 {strides = array<i32>} : memref<8x8x8xf32, #tpu.memory_space<vmem>>, vector<1x8x8xf32>,
    %68 = vector.extract_strided_slice %43 {offsets = [3, 0], sizes = [1, 128], strides = [1, 1]} : vector<8x128xf32> to vector<1x128xf32>
    %69 = vector.shape_cast %68 : vector<1x128xf32> to vector<1x128xf32>
    %70 = vector.broadcast %69 : vector<1x128xf32> to vector<8x128xf32>
    %c8_i32_26 = arith.constant 8 : i32
    %71 = tpu.dynamic_rotate %70 by %c8_i32_26 dim 1 {stride = 1 : si32, stride_dimension = 0 : si32} : vector<8x128xf32>, i32 -> vector<8x128xf32>
    %72 = vector.extract_strided_slice %71 {offsets = [0, 0], sizes = [8, 8], strides = [1, 1]} : vector<8x128xf32> to vector<8x8xf32>
    %c3 = arith.constant 3 : index
    %c0_27 = arith.constant 0 : index
    %c0_28 = arith.constant 0 : index
    %73 = vector.load %arg8[%c3, %c0_27, %c0_28] : memref<8x8x8xf32, #tpu.memory_space<vmem>>, vector<1x8x8xf32>
    %74 = vector.shape_cast %73 : vector<1x8x8xf32> to vector<8x8xf32>
    %75 = vector.shape_cast %72 : vector<8x8xf32> to vector<1x8x8xf32>
    tpu.vector_store %arg8[%c3, %c0_27, %c0_28], %75 {strides = array<i32>} : memref<8x8x8xf32, #tpu.memory_space<vmem>>, vector<1x8x8xf32>,
    %76 = vector.extract_strided_slice %43 {offsets = [4, 0], sizes = [1, 128], strides = [1, 1]} : vector<8x128xf32> to vector<1x128xf32>
    %77 = vector.shape_cast %76 : vector<1x128xf32> to vector<1x128xf32>
    %78 = vector.broadcast %77 : vector<1x128xf32> to vector<8x128xf32>
    %c8_i32_29 = arith.constant 8 : i32
    %79 = tpu.dynamic_rotate %78 by %c8_i32_29 dim 1 {stride = 1 : si32, stride_dimension = 0 : si32} : vector<8x128xf32>, i32 -> vector<8x128xf32>
    %80 = vector.extract_strided_slice %79 {offsets = [0, 0], sizes = [8, 8], strides = [1, 1]} : vector<8x128xf32> to vector<8x8xf32>
    %c4 = arith.constant 4 : index
    %c0_30 = arith.constant 0 : index
    %c0_31 = arith.constant 0 : index
    %81 = vector.load %arg8[%c4, %c0_30, %c0_31] : memref<8x8x8xf32, #tpu.memory_space<vmem>>, vector<1x8x8xf32>
    %82 = vector.shape_cast %81 : vector<1x8x8xf32> to vector<8x8xf32>
    %83 = vector.shape_cast %80 : vector<8x8xf32> to vector<1x8x8xf32>
    tpu.vector_store %arg8[%c4, %c0_30, %c0_31], %83 {strides = array<i32>} : memref<8x8x8xf32, #tpu.memory_space<vmem>>, vector<1x8x8xf32>,
    %84 = vector.extract_strided_slice %43 {offsets = [5, 0], sizes = [1, 128], strides = [1, 1]} : vector<8x128xf32> to vector<1x128xf32>
    %85 = vector.shape_cast %84 : vector<1x128xf32> to vector<1x128xf32>
    %86 = vector.broadcast %85 : vector<1x128xf32> to vector<8x128xf32>
    %c8_i32_32 = arith.constant 8 : i32
    %87 = tpu.dynamic_rotate %86 by %c8_i32_32 dim 1 {stride = 1 : si32, stride_dimension = 0 : si32} : vector<8x128xf32>, i32 -> vector<8x128xf32>
    %88 = vector.extract_strided_slice %87 {offsets = [0, 0], sizes = [8, 8], strides = [1, 1]} : vector<8x128xf32> to vector<8x8xf32>
    %c5 = arith.constant 5 : index
    %c0_33 = arith.constant 0 : index
    %c0_34 = arith.constant 0 : index
    %89 = vector.load %arg8[%c5, %c0_33, %c0_34] : memref<8x8x8xf32, #tpu.memory_space<vmem>>, vector<1x8x8xf32>
    %90 = vector.shape_cast %89 : vector<1x8x8xf32> to vector<8x8xf32>
    %91 = vector.shape_cast %88 : vector<8x8xf32> to vector<1x8x8xf32>
    tpu.vector_store %arg8[%c5, %c0_33, %c0_34], %91 {strides = array<i32>} : memref<8x8x8xf32, #tpu.memory_space<vmem>>, vector<1x8x8xf32>,
    %92 = vector.extract_strided_slice %43 {offsets = [6, 0], sizes = [1, 128], strides = [1, 1]} : vector<8x128xf32> to vector<1x128xf32>
    %93 = vector.shape_cast %92 : vector<1x128xf32> to vector<1x128xf32>
    %94 = vector.broadcast %93 : vector<1x128xf32> to vector<8x128xf32>
    %c8_i32_35 = arith.constant 8 : i32
    %95 = tpu.dynamic_rotate %94 by %c8_i32_35 dim 1 {stride = 1 : si32, stride_dimension = 0 : si32} : vector<8x128xf32>, i32 -> vector<8x128xf32>
    %96 = vector.extract_strided_slice %95 {offsets = [0, 0], sizes = [8, 8], strides = [1, 1]} : vector<8x128xf32> to vector<8x8xf32>
    %c6 = arith.constant 6 : index
    %c0_36 = arith.constant 0 : index
    %c0_37 = arith.constant 0 : index
    %97 = vector.load %arg8[%c6, %c0_36, %c0_37] : memref<8x8x8xf32, #tpu.memory_space<vmem>>, vector<1x8x8xf32>
    %98 = vector.shape_cast %97 : vector<1x8x8xf32> to vector<8x8xf32>
    %99 = vector.shape_cast %96 : vector<8x8xf32> to vector<1x8x8xf32>
    tpu.vector_store %arg8[%c6, %c0_36, %c0_37], %99 {strides = array<i32>} : memref<8x8x8xf32, #tpu.memory_space<vmem>>, vector<1x8x8xf32>,
    %100 = vector.extract_strided_slice %43 {offsets = [7, 0], sizes = [1, 128], strides = [1, 1]} : vector<8x128xf32> to vector<1x128xf32>
    %101 = vector.shape_cast %100 : vector<1x128xf32> to vector<1x128xf32>
    %102 = vector.broadcast %101 : vector<1x128xf32> to vector<8x128xf32>
    %c8_i32_38 = arith.constant 8 : i32
    %103 = tpu.dynamic_rotate %102 by %c8_i32_38 dim 1 {stride = 1 : si32, stride_dimension = 0 : si32} : vector<8x128xf32>, i32 -> vector<8x128xf32>
    %104 = vector.extract_strided_slice %103 {offsets = [0, 0], sizes = [8, 8], strides = [1, 1]} : vector<8x128xf32> to vector<8x8xf32>
    %c7 = arith.constant 7 : index
    %c0_39 = arith.constant 0 : index
    %c0_40 = arith.constant 0 : index
    %105 = vector.load %arg8[%c7, %c0_39, %c0_40] : memref<8x8x8xf32, #tpu.memory_space<vmem>>, vector<1x8x8xf32>
    %106 = vector.shape_cast %105 : vector<1x8x8xf32> to vector<8x8xf32>
    %107 = vector.shape_cast %104 : vector<8x8xf32> to vector<1x8x8xf32>
    tpu.vector_store %arg8[%c7, %c0_39, %c0_40], %107 {strides = array<i32>} : memref<8x8x8xf32, #tpu.memory_space<vmem>>, vector<1x8x8xf32>,
    return
  }
  func.func @transform_0(%arg0: i32, %arg1: i32) -> (i32, i32) {
    %c0_i32 = arith.constant 0 : i32
    %c0_i32_0 = arith.constant 0 : i32
    %c0_i32_1 = arith.constant 0 : i32
    return %c0_i32, %c0_i32_0 : i32, i32
  }
  func.func @transform_1(%arg0: i32, %arg1: i32) -> (i32, i32) {
    %c0_i32 = arith.constant 0 : i32
    %c0_i32_0 = arith.constant 0 : i32
    %c0_i32_1 = arith.constant 0 : i32
    return %c0_i32, %c0_i32_0 : i32, i32
  }
  func.func @transform_2(%arg0: i32, %arg1: i32) -> (i32, i32) {
    %c0_i32 = arith.constant 0 : i32
    %c0_i32_0 = arith.constant 0 : i32
    %c0_i32_1 = arith.constant 0 : i32
    return %c0_i32, %c0_i32_0 : i32, i32
  }
  func.func @transform_3(%arg0: i32, %arg1: i32) -> (i32, i32) {
    %c0_i32 = arith.constant 0 : i32
    %c0_i32_0 = arith.constant 0 : i32
    %c0_i32_1 = arith.constant 0 : i32
    return %c0_i32, %c0_i32_0 : i32, i32
  }
  func.func @transform_4(%arg0: i32, %arg1: i32) -> (i32, i32) {
    %c0_i32 = arith.constant 0 : i32
    %c0_i32_0 = arith.constant 0 : i32
    %c0_i32_1 = arith.constant 0 : i32
    return %c0_i32, %c0_i32_0 : i32, i32
  }
  func.func @transform_5(%arg0: i32, %arg1: i32) -> (i32, i32) {
    %c0_i32 = arith.constant 0 : i32
    %c0_i32_0 = arith.constant 0 : i32
    %c0_i32_1 = arith.constant 0 : i32
    return %c0_i32, %c0_i32_0 : i32, i32
  }
  func.func @transform_6(%arg0: i32, %arg1: i32) -> (i32, i32, i32) {
    %c0_i32 = arith.constant 0 : i32
    %c0_i32_0 = arith.constant 0 : i32
    return %c0_i32, %arg0, %arg1 : i32, i32, i32
  }
}

</mosaic_0001>

<bundles_post_ra>
// kernel: tpu_custom_call.1
= control target key start
LH: loop header
LB: loop body
LE: loop exit
PB: predicated region body
PF: predicated region fallthrough
CT: control target
= control target key end

     0   :  { %v1817_v2 = vmov 0   ;;  %s2036_s0 = inlined_call_operand.vmem [shape: f32[32,1], index: 0, kind: input, shape index: {}]   ;;  %s2037_s1 = inlined_call_operand.vmem [shape: f32[32,1], index: 1, kind: input, shape index: {}]   ;;  %s2038_s2 = inlined_call_operand.vmem [shape: f32[32,32], index: 2, kind: input, shape index: {}]   ;;  %s2039_s3 = inlined_call_operand.vmem [shape: f32[32,1], index: 3, kind: input, shape index: {}]   ;;  %s2040_s4 = inlined_call_operand.vmem [shape: f32[8,32], index: 4, kind: input, shape index: {}]   ;;  %s2041_s5 = inlined_call_operand.vmem [shape: f32[8,1], index: 5, kind: input, shape index: {}]   ;;  %s2042_s6 = inlined_call_operand.hbm [shape: f32[8,8,8], index: 6, kind: output, shape index: {}]  }
   0x1   :  { %v65_v0 = vld [vmem:[%s2037_s1] sm:$0xff]  ;;  %1760 = vset.pattern.permute.xlu1 %v1817_v2  ;;  %1759 = vset.pattern.permute.xlu0 %v1817_v2  ;;  %v66_v3 = vld [vmem:[%s2037_s1 + $0x8] sm:$0xff] }
   0x2   :  { %v37_v1 = vld [vmem:[%s2036_s0] sm:$0xff]  ;;  %71 = vperm.xlu1 %1760, %v65_v0   ;;  %v38_v4 = vld [vmem:[%s2036_s0 + $0x8] sm:$0xff] }
   0x3   :  { %43 = vperm.xlu0 %1759, %v37_v1  }
   0x4   :  { %11 = vsyncpa [#allocation3], 0  ;;  %v40_v5 = vld [vmem:[%s2036_s0 + $0x18] sm:$0xff]  ;;  %v39_v6 = vld [vmem:[%s2036_s0 + $0x10] sm:$0xff]  ;;  %vm149_vm0 = vcmask 261120   ;;  %v27_v21 = vlaneseq  ;;  %vm1819_vm2 = vmmov 0  }
   0x5   :  { %v68_v7 = vld [vmem:[%s2037_s1 + $0x18] sm:$0xff]  ;;  %v67_v8 = vld [vmem:[%s2037_s1 + $0x10] sm:$0xff]  ;;  %v126_v9 = vld [vmem:[%s2039_s3 + $0x8] sm:$0xff]  ;;  %vm1307_vm3 = vcmask 64512   ;;  %s1822_s28 = smov [#allocation2]  }
   0x6   :  { %76 = vperm.xlu1 %1760, %v66_v3   ;;  %v125_v10 = vld [vmem:[%s2039_s3] sm:$0xff]  ;;  %v128_v11 = vld [vmem:[%s2039_s3 + $0x18] sm:$0xff]  ;;  %v127_v12 = vld [vmem:[%s2039_s3 + $0x10] sm:$0xff]  ;;  %v28_v22 = vand.u32 127, %v27_v21  ;;  %s1384_s29 = sshll.u32 %s1822_s28, 4  ;;  %s1385_s29 = int_to_ptr.vmem [resolvable:$true] %s1384_s29 }
   0x7   :  { %48 = vperm.xlu0 %1759, %v38_v4   ;;  %v805_v13 = vld [vmem:[%s2041_s5] sm:$0xff]  ;;  %v122_v52 = vld [vmem:[%s2038_s2 + $0x8] sm:$0xff]  ;;  %v123_v54 = vld [vmem:[%s2038_s2 + $0x10] sm:$0xff]  ;;  %s1793_s30 = scalar_lea.vmem %s1385_s29, 1024  ;;  %p1798_p1 = scmp.lt.s32.totalorder %s1385_s29, %s1385_s29 }
   0x8   :  { %v121_v14 = vld [vmem:[%s2038_s2] sm:$0xff]  ;;  %v29_v23 = vadd.s32 15, %v28_v22  ;;  %v154_v58 = vsel %vm149_vm0, %v122_v52, 0  ;;  %v157_v60 = vsel %vm149_vm0, %v123_v54, 0  ;;  %v124_v61 = vld [vmem:[%s2038_s2 + $0x18] sm:$0xff]  ;;  %p1794_p0 = scmp.ne.s32.totalorder %s1385_s29, %s1793_s30  ;;  %p1799_p2 = scmp.lt.s32.totalorder %s1793_s30, %s1793_s30 }
   0x9   :  { %v151_v15 = vsel %vm149_vm0, %v121_v14, 0  ;;  %v1924_v63 = vand.u32 4294901760, %v154_v58  ;;  %v1926_v1 = vand.u32 4294901760, %v157_v60  ;;  %v160_v2 = vsel %vm149_vm0, %v124_v61, 0 }
   0xa   :  { %58 = vperm.xlu1 %1760, %v40_v5   ;;  %v1903_v16 = vand.u32 4294901760, %v151_v15  ;;  %v1395_v24 = vadd.s32 4294967168, %v29_v23  ;;  %vm30_vm1 = vcmp.ge.s32.totalorder %v29_v23, 128  ;;  %p1800_p3 = por %p1799_p2, %p1798_p1 }
   0xb   :  { %53 = vperm.xlu0 %1759, %v39_v6   ;;  %v1932_v6 = vsub.f32 %v154_v58, %v1924_v63 }
   0xc   :  { %v1906_v17 = vsub.f32 %v151_v15, %v1903_v16  ;;  %v32_v25 = vsel %vm30_vm1, %v1395_v24, %v29_v23  ;;  %p1801_p4 = pnand %p1800_p3, %p1794_p0 }
   0xd   :  { %v35_v26 = vsub.s32 7, %v32_v25  ;;  %v243_v14 = vand.u32 4294901760, %v1932_v6 }
   0xe   :  { %86 = vperm.xlu1 %1760, %v68_v7   ;;  %v233_v18 = vand.u32 4294901760, %v1906_v17  ;;  %v1934_v7 = vand.u32 4294901760, %v160_v2 }
   0xf   :  { %81 = vperm.xlu0 %1759, %v67_v8   ;;  %v36_v27 = vcvt.s32.f32 %v35_v26 }
  0x10   :  { %v234_v19 = vsub.f32 %v1906_v17, %v233_v18  ;;  %v1944_v15 = vsub.f32 %v160_v2, %v1934_v7 }
  0x12   :  { %136 = vperm.xlu1 %1760, %v126_v9   ;;  %v235_v20 = vand.u32 4294901760, %v234_v19 }
  0x13   :  { %131 = vperm.xlu0 %1759, %v125_v10   ;;  %v1938_v10 = vsub.f32 %v157_v60, %v1926_v1 }
  0x14   :  { %1490 = vmatprep.mubr.f32.mxu0 %v235_v20 }
  0x15   :  { %v253_v24 = vand.u32 4294901760, %v1938_v10 }
  0x16   :  { %146 = vperm.xlu1 %1760, %v128_v11  }
  0x17   :  { %141 = vperm.xlu0 %1759, %v127_v12  }
  0x1b   :  { %808 = vperm.xlu0 %1759, %v805_v13  }
  0x81   :  { %v72_v28 = vpop.permute.xlu1 %71 }
  0x82   :  { %v44_v29 = vpop.permute.xlu0 %43 }
  0x83   :  { %v61_v30 = vmul.f32 %v44_v29, %v36_v27  ;;  %v244_v29 = vsub.f32 %v1932_v6, %v243_v14 }
  0x85   :  { %v89_v31 = vadd.f32 %v72_v28, %v61_v30  ;;  %v77_v32 = vpop.permute.xlu1 %76  ;;  %v263_v30 = vand.u32 4294901760, %v1944_v15 }
  0x86   :  { %v49_v33 = vpop.permute.xlu0 %48 }
  0x87   :  { %v1396_v34 = vmul.f32 -1.442695, %v89_v31  ;;  %v62_v35 = vmul.f32 %v49_v33, %v36_v27 }
  0x89   :  { %1761 = vpow2.f32 %v1396_v34  ;;  %v90_v36 = vadd.f32 %v77_v32, %v62_v35  ;;  %v59_v37 = vpop.permute.xlu1 %58  ;;  %v254_v34 = vsub.f32 %v1938_v10, %v253_v24 }
  0x8a   :  { %v54_v38 = vpop.permute.xlu0 %53  ;;  %v64_v40 = vmul.f32 %v59_v37, %v36_v27 }
  0x8b   :  { %v1397_v39 = vmul.f32 -1.442695, %v90_v36  ;;  %v63_v41 = vmul.f32 %v54_v38, %v36_v27 }
  0x8d   :  { %1763 = vpow2.f32 %v1397_v39  ;;  %v87_v42 = vpop.permute.xlu1 %86  ;;  %v245_v39 = vand.u32 4294901760, %v244_v29 }
  0x8e   :  { %v82_v43 = vpop.permute.xlu0 %81  ;;  %v92_v44 = vadd.f32 %v87_v42, %v64_v40  ;;  %v264_v40 = vsub.f32 %v1944_v15, %v263_v30  ;;  %v255_v42 = vand.u32 4294901760, %v254_v34 }
  0x8f   :  { %v91_v45 = vadd.f32 %v82_v43, %v63_v41 }
  0x90   :  { %v1399_v46 = vmul.f32 -1.442695, %v92_v44 }
  0x91   :  { %v1398_v47 = vmul.f32 -1.442695, %v91_v45 }
  0x92   :  { %1765 = vpow2.f32 %v1399_v46  ;;  %v265_v46 = vand.u32 4294901760, %v264_v40  ;;  %v132_v54 = vpop.permute.xlu0 %131 }
  0x93   :  { %v1762_v48 = vpop.eup %1761  ;;  %1767 = vpow2.f32 %v1398_v47 }
  0x94   :  { %v105_v49 = vadd.f32 1.0, %v1762_v48 }
  0x96   :  { %1769 = vrcp.f32 %v105_v49 }
  0x97   :  { %v1764_v50 = vpop.eup %1763 }
  0x98   :  { %v106_v51 = vadd.f32 1.0, %v1764_v50 }
  0x9a   :  { %1771 = vrcp.f32 %v106_v51 }
  0x9c   :  { %v1766_v53 = vpop.eup %1765 }
  0x9d   :  { %v1768_v55 = vpop.eup %1767  ;;  %v108_v56 = vadd.f32 1.0, %v1766_v53  ;;  %v137_v53 = vpop.permute.xlu1 %136 }
  0x9e   :  { %v107_v57 = vadd.f32 1.0, %v1768_v55 }
  0x9f   :  { %1773 = vrcp.f32 %v108_v56 }
  0xa0   :  { %v1770_v59 = vpop.eup %1769  ;;  %1775 = vrcp.f32 %v107_v57 }
  0xa1   :  { %v117_v62 = vmul.f32 %v1770_v59, %v89_v31  ;;  %v147_v59 = vpop.permute.xlu1 %146 }
  0xa3   :  { %v163_v0 = vand.u32 4294901760, %v117_v62 }
  0xa4   :  { %v1772_v3 = vpop.eup %1771 }
  0xa5   :  { %v1929_v4 = vsub.f32 %v117_v62, %v163_v0  ;;  %v118_v5 = vmul.f32 %v1772_v3, %v90_v36  ;;  %v142_v62 = vpop.permute.xlu0 %141 }
  0xa7   :  { %v166_v8 = vand.u32 4294901760, %v118_v5  ;;  %v274_v9 = vand.u32 4294901760, %v1929_v4 }
  0xa9   :  { %v1940_v11 = vpack.c.bf16 %v166_v8, %v163_v0  ;;  %v280_v12 = vsub.f32 %v118_v5, %v166_v8  ;;  %v1774_v13 = vpop.eup %1773  ;;  %v275_v22 = vsub.f32 %v1929_v4, %v274_v9  ;;  %v804_v8 = vld [vmem:[%s2040_s4] sm:$0xff]  ;;  %s1821_s4 = smov 264  }
  0xaa   :  { %v1776_v19 = vpop.eup %1775  ;;  %v120_v20 = vmul.f32 %v1774_v13, %v92_v44 }
  0xab   :  { %1633 = vmatprep.subr.bf16.mxu0 %v1940_v11  ;;  %v281_v23 = vand.u32 4294901760, %v280_v12  ;;  %v119_v25 = vmul.f32 %v1776_v19, %v91_v45  ;;  %v276_v32 = vand.u32 4294901760, %v275_v22  ;;  %v1648_v49 = vpack.c.bf16 %v280_v12, %v1929_v4 }
  0xac   :  { %1635 = vmatpush3.bf16.msra.mxu0 %v1940_v11  ;;  %v172_v26 = vand.u32 4294901760, %v120_v20 }
  0xad   :  { %v282_v27 = vsub.f32 %v280_v12, %v281_v23  ;;  %v169_v28 = vand.u32 4294901760, %v119_v25  ;;  %v1664_v51 = vpack.c.bf16 %v281_v23, %v274_v9  ;;  %v812_v12 = vsel %vm149_vm0, %v804_v8, 0 }
  0xae   :  { %v294_v31 = vsub.f32 %v120_v20, %v172_v26 }
  0xaf   :  { %v283_v33 = vand.u32 4294901760, %v282_v27  ;;  %v1636_v35 = vpack.c.bf16 %v172_v26, %v169_v28  ;;  %v287_v36 = vsub.f32 %v119_v25, %v169_v28 }
  0xb0   :  { %v295_v38 = vand.u32 4294901760, %v294_v31 }
  0xb1   :  { %v1640_v37 = vpack.c.bf16 %v283_v33, %v276_v32  ;;  %1637 = vmatprep.subr.bf16.mxu0 %v1636_v35  ;;  %v288_v41 = vand.u32 4294901760, %v287_v36  ;;  %v1652_v50 = vpack.c.bf16 %v294_v31, %v287_v36 }
  0xb2   :  { %1639 = vmatpush3.bf16.msra.mxu0 %v1636_v35  ;;  %v296_v43 = vsub.f32 %v294_v31, %v295_v38 }
  0xb3   :  { %1641 = vmatprep.subr.bf16.mxu0 %v1640_v37  ;;  %v289_v44 = vsub.f32 %v287_v36, %v288_v41  ;;  %v1668_v52 = vpack.c.bf16 %v295_v38, %v288_v41 }
  0xb4   :  { %v297_v45 = vand.u32 4294901760, %v296_v43 }
  0xb5   :  { %1491 = vmatmul.mubr.f32.vlgmr.msra.gmra.mrb[0].mxu0 %v245_v39  ;;  %v290_v47 = vand.u32 4294901760, %v289_v44 }
  0xb6   :  { %1643 = vmatpush3.bf16.msra.mxu0 %v1640_v37  ;;  %1493 = vmatprep.mubr.f32.mxu0 %v255_v42 }
  0xb7   :  { %v1644_v48 = vpack.c.bf16 %v297_v45, %v290_v47 }
  0xb9   :  { %1494 = vmatmul.mubr.f32.gmra.mrb[2].mxu0 %v265_v46  ;;  %1645 = vmatprep.subr.bf16.mxu0 %v1644_v48 }
  0xba   :  { %1647 = vmatpush3.bf16.msra.mxu0 %v1644_v48  ;;  %1504 = vmatprep.mubr.f32.mxu0 %v1903_v16 }
  0xbb   :  { %1649 = vmatprep.subr.bf16.mxu0 %v1648_v49 }
  0xbd   :  { %1505 = vmatmul.mubr.f32.vlgmr.msra.gmra.mrb[0].mxu0 %v1924_v63 }
  0xbe   :  { %1651 = vmatpush3.bf16.msra.mxu0 %v1648_v49  ;;  %1507 = vmatprep.mubr.f32.mxu0 %v1926_v1 }
  0xbf   :  { %1653 = vmatprep.subr.bf16.mxu0 %v1652_v50 }
  0xc1   :  { %1508 = vmatmul.mubr.f32.gmra.mrb[2].mxu0 %v1934_v7 }
  0xc2   :  { %1655 = vmatpush3.bf16.msra.mxu0 %v1652_v50  ;;  %1518 = vmatprep.mubr.f32.mxu0 %v1906_v17  ;;  %v1818_v17 = vmov 0.0|0.0  }
  0xc3   :  { %1657 = vmatprep.subr.bf16.mxu0 %v1940_v11  ;;  %1680 = vmatprep.subr.bf16.mxu1 %v1818_v17 }
  0xc5   :  { %1519 = vmatmul.mubr.f32.vlgmr.msra.gmra.mrb[0].mxu0 %v1932_v6 }
  0xc6   :  { %1659 = vmatpush3.bf16.msra.mxu0 %v1940_v11  ;;  %1521 = vmatprep.mubr.f32.mxu0 %v1938_v10 }
  0xc7   :  { %1661 = vmatprep.subr.bf16.mxu0 %v1636_v35 }
  0xc9   :  { %1522 = vmatmul.mubr.f32.gmra.mrb[2].mxu0 %v1944_v15 }
  0xca   :  { %1663 = vmatpush3.bf16.msra.mxu0 %v1636_v35  ;;  %1532 = vmatprep.mubr.f32.mxu0 %v233_v18  ;;  %v1820_v18 = vmov 0.0  }
  0xcb   :  { %1665 = vmatprep.subr.bf16.mxu0 %v1664_v51  ;;  %1574 = vmatprep.mubr.msk.f32.mxu1 %vm1819_vm2, %v1820_v18 }
  0xcd   :  { %1533 = vmatmul.mubr.f32.vlgmr.msra.gmra.mrb[0].mxu0 %v243_v14  ;;  %v1988_v14 = vand.u32 4294901760, %v812_v12 }
  0xce   :  { %1667 = vmatpush3.bf16.msra.mxu0 %v1664_v51  ;;  %1535 = vmatprep.mubr.f32.mxu0 %v253_v24 }
  0xcf   :  { %1669 = vmatprep.subr.bf16.mxu0 %v1668_v52  ;;  %v884_v15 = vsub.f32 %v812_v12, %v1988_v14 }
  0xd1   :  { %1536 = vmatmul.mubr.f32.gmra.mrb[2].mxu0 %v263_v30  ;;  %v885_v25 = vand.u32 4294901760, %v884_v15 }
  0xd2   :  { %1671 = vmatpush3.bf16.msra.mxu0 %v1668_v52  ;;  %1546 = vmatprep.mubr.f32.mxu0 %v1903_v16 }
  0xd3   :  { %1673 = vmatprep.subr.bf16.mxu0 %v1940_v11  ;;  %v886_v36 = vsub.f32 %v884_v15, %v885_v25 }
  0xd5   :  { %1547 = vmatmul.mubr.f32.vlgmr.msra.gmra.mrb[0].mxu0 %v1924_v63  ;;  %v887_v47 = vand.u32 4294901760, %v886_v36 }
  0xd6   :  { %1675 = vmatpush3.bf16.msra.mxu0 %v1940_v11  ;;  %1549 = vmatprep.mubr.f32.mxu0 %v1926_v1 }
  0xd7   :  { %1677 = vmatprep.subr.bf16.mxu0 %v1636_v35 }
  0xd9   :  { %1550 = vmatmul.mubr.f32.gmra.mrb[2].mxu0 %v1934_v7 }
  0xda   :  { %1679 = vmatpush3.bf16.msra.mxu0 %v1636_v35  ;;  %1560 = vmatprep.mubr.f32.mxu0 %v1903_v16 }
  0xdd   :  { %1561 = vmatmul.mubr.f32.vlgmr.msra.gmra.mrb[0].mxu0 %v1924_v63 }
  0xde   :  { %1563 = vmatprep.mubr.f32.mxu0 %v1926_v1 }
  0xe1   :  { %1564 = vmatmul.mubr.f32.gmra.mrb[2].mxu0 %v1934_v7 }
 0x1b0   :  { %v1562_v55 = vpop.f32.mrb[0].mxu0 }
 0x1b1   :  { %v1716_v56 = vadd.f32 %v1562_v55, %v137_v53  ;;  %v754_v57 = vpop.f32.mrb[1].mxu0 }
 0x1b2   :  { %v1717_v16 = vadd.f32 %v754_v57, %v132_v54 }
 0x1b3   :  { %v1401_v58 = vmul.f32 -1.442695, %v1716_v56 }
 0x1b4   :  { %v1400_v60 = vmul.f32 -1.442695, %v1717_v16  ;;  %v1565_v61 = vpop.f32.mrb[2].mxu0 }
 0x1b5   :  { %1777 = vpow2.f32 %v1401_v58  ;;  %v1718_v63 = vadd.f32 %v1565_v61, %v147_v59  ;;  %v766_v0 = vpop.f32.mrb[3].mxu0  ;;  %v1300_v58 = vshrl.u32 %v27_v21, 7 }
 0x1b6   :  { %1779 = vpow2.f32 %v1400_v60  ;;  %v1719_v1 = vadd.f32 %v766_v0, %v142_v62 }
 0x1b7   :  { %v1403_v2 = vmul.f32 -1.442695, %v1718_v63  ;;  %v1311_v59 = vsub.s32 1, %v1300_v58  ;;  %v1301_v60 = vsub.s32 0, %v1300_v58  ;;  %v1331_v61 = vsub.s32 3, %v1300_v58 }
 0x1b8   :  { %v1402_v3 = vmul.f32 -1.442695, %v1719_v1  ;;  %v1321_v62 = vsub.s32 2, %v1300_v58 }
 0x1b9   :  { %1781 = vpow2.f32 %v1403_v2  ;;  %v1341_v2 = vsub.s32 4, %v1300_v58 }
 0x1ba   :  { %1783 = vpow2.f32 %v1402_v3  ;;  %v1371_v3 = vsub.s32 7, %v1300_v58 }
 0x1bf   :  { %v1778_v4 = vpop.eup %1777 }
 0x1c0   :  { %v1780_v5 = vpop.eup %1779  ;;  %v789_v6 = vadd.f32 1.0, %v1778_v4  ;;  %v1361_v4 = vsub.s32 6, %v1300_v58 }
 0x1c1   :  { %v788_v7 = vadd.f32 1.0, %v1780_v5 }
 0x1c2   :  { %1785 = vrcp.f32 %v789_v6 }
 0x1c3   :  { %v1782_v9 = vpop.eup %1781  ;;  %1787 = vrcp.f32 %v788_v7 }
 0x1c4   :  { %v1784_v10 = vpop.eup %1783  ;;  %v791_v11 = vadd.f32 1.0, %v1782_v9 }
 0x1c5   :  { %v790_v13 = vadd.f32 1.0, %v1784_v10 }
 0x1c6   :  { %1789 = vrcp.f32 %v791_v11 }
 0x1c7   :  { %1791 = vrcp.f32 %v790_v13 }
 0x1cc   :  { %v1786_v19 = vpop.eup %1785 }
 0x1cd   :  { %v1788_v20 = vpop.eup %1787  ;;  %v801_v22 = vmul.f32 %v1786_v19, %v1716_v56 }
 0x1ce   :  { %v800_v23 = vmul.f32 %v1788_v20, %v1717_v16 }
 0x1cf   :  { %v818_v24 = vand.u32 4294901760, %v801_v22 }
 0x1d0   :  { %v1790_v26 = vpop.eup %1789  ;;  %v815_v27 = vand.u32 4294901760, %v800_v23 }
 0x1d1   :  { %v1792_v28 = vpop.eup %1791  ;;  %v902_v29 = vsub.f32 %v801_v22, %v818_v24  ;;  %v803_v30 = vmul.f32 %v1790_v26, %v1718_v63  ;;  %v809_v63 = vpop.permute.xlu0 %808 }
 0x1d2   :  { %v895_v31 = vsub.f32 %v800_v23, %v815_v27  ;;  %v802_v32 = vmul.f32 %v1792_v28, %v1719_v1  ;;  %v1681_v33 = vpack.c.bf16 %v818_v24, %v815_v27  ;;  %v1351_v1 = vsub.s32 5, %v1300_v58 }
 0x1d3   :  { %v903_v34 = vand.u32 4294901760, %v902_v29  ;;  %v824_v35 = vand.u32 4294901760, %v803_v30 }
 0x1d4   :  { %v896_v37 = vand.u32 4294901760, %v895_v31  ;;  %v821_v38 = vand.u32 4294901760, %v802_v32  ;;  %1682 = vmatpush3.bf16.msra.mxu1 %v1681_v33  ;;  %v1693_v39 = vpack.c.bf16 %v902_v29, %v895_v31 }
 0x1d5   :  { %v904_v40 = vsub.f32 %v902_v29, %v903_v34  ;;  %v916_v41 = vsub.f32 %v803_v30, %v824_v35  ;;  %1683 = vmatprep.subr.bf16.mxu1 %v1818_v17 }
 0x1d6   :  { %v897_v42 = vsub.f32 %v895_v31, %v896_v37  ;;  %v909_v43 = vsub.f32 %v802_v32, %v821_v38  ;;  %v1684_v44 = vpack.c.bf16 %v824_v35, %v821_v38  ;;  %v1705_v45 = vpack.c.bf16 %v903_v34, %v896_v37 }
 0x1d7   :  { %v917_v46 = vand.u32 4294901760, %v916_v41  ;;  %v905_v48 = vand.u32 4294901760, %v904_v40 }
 0x1d8   :  { %v910_v49 = vand.u32 4294901760, %v909_v43  ;;  %1685 = vmatpush3.bf16.msra.mxu1 %v1684_v44  ;;  %v898_v50 = vand.u32 4294901760, %v897_v42  ;;  %v1696_v51 = vpack.c.bf16 %v916_v41, %v909_v43 }
 0x1d9   :  { %v918_v52 = vsub.f32 %v916_v41, %v917_v46  ;;  %1686 = vmatprep.subr.bf16.mxu1 %v1818_v17 }
 0x1da   :  { %v911_v53 = vsub.f32 %v909_v43, %v910_v49  ;;  %v1687_v54 = vpack.c.bf16 %v905_v48, %v898_v50  ;;  %v1708_v55 = vpack.c.bf16 %v917_v46, %v910_v49 }
 0x1db   :  { %1575 = vmatmul.mubr.f32.vlgmr.msra.gmra.mrb[0].mxu1 %v887_v47  ;;  %v919_v56 = vand.u32 4294901760, %v918_v52 }
 0x1dc   :  { %1688 = vmatpush3.bf16.msra.mxu1 %v1687_v54  ;;  %v912_v57 = vand.u32 4294901760, %v911_v53  ;;  %1585 = vmatprep.mubr.msk.f32.mxu1 %vm1819_vm2, %v1820_v18 }
 0x1dd   :  { %1689 = vmatprep.subr.bf16.mxu1 %v1818_v17 }
 0x1de   :  { %v1690_v16 = vpack.c.bf16 %v919_v56, %v912_v57 }
 0x1e0   :  { %1691 = vmatpush3.bf16.msra.mxu1 %v1690_v16 }
 0x1e1   :  { %1692 = vmatprep.subr.bf16.mxu1 %v1818_v17 }
 0x1e3   :  { %1586 = vmatmul.mubr.f32.vlgmr.msra.gmra.mrb[0].mxu1 %v1988_v14 }
 0x1e4   :  { %1694 = vmatpush3.bf16.msra.mxu1 %v1693_v39  ;;  %1596 = vmatprep.mubr.msk.f32.mxu1 %vm1819_vm2, %v1820_v18 }
 0x1e5   :  { %1695 = vmatprep.subr.bf16.mxu1 %v1818_v17 }
 0x1e8   :  { %1697 = vmatpush3.bf16.msra.mxu1 %v1696_v51 }
 0x1e9   :  { %1698 = vmatprep.subr.bf16.mxu1 %v1818_v17 }
 0x1eb   :  { %1597 = vmatmul.mubr.f32.vlgmr.msra.gmra.mrb[0].mxu1 %v884_v15 }
 0x1ec   :  { %1700 = vmatpush3.bf16.msra.mxu1 %v1681_v33  ;;  %1607 = vmatprep.mubr.msk.f32.mxu1 %vm1819_vm2, %v1820_v18 }
 0x1ed   :  { %1701 = vmatprep.subr.bf16.mxu1 %v1818_v17 }
 0x1f0   :  { %1703 = vmatpush3.bf16.msra.mxu1 %v1684_v44 }
 0x1f1   :  { %1704 = vmatprep.subr.bf16.mxu1 %v1818_v17 }
 0x1f3   :  { %1608 = vmatmul.mubr.f32.vlgmr.msra.gmra.mrb[0].mxu1 %v885_v25 }
 0x1f4   :  { %1706 = vmatpush3.bf16.msra.mxu1 %v1705_v45  ;;  %1618 = vmatprep.mubr.msk.f32.mxu1 %vm1819_vm2, %v1820_v18 }
 0x1f5   :  { %1707 = vmatprep.subr.bf16.mxu1 %v1818_v17 }
 0x1f8   :  { %1709 = vmatpush3.bf16.msra.mxu1 %v1708_v55 }
 0x1f9   :  { %1710 = vmatprep.subr.bf16.mxu1 %v1818_v17 }
 0x1fb   :  { %1619 = vmatmul.mubr.f32.vlgmr.msra.gmra.mrb[0].mxu1 %v1988_v14 }
 0x1fc   :  { %1712 = vmatpush3.bf16.msra.mxu1 %v1681_v33  ;;  %1629 = vmatprep.mubr.msk.f32.mxu1 %vm1819_vm2, %v1820_v18 }
 0x1fd   :  { %1713 = vmatprep.subr.bf16.mxu1 %v1818_v17 }
 0x200   :  { %1715 = vmatpush3.bf16.msra.mxu1 %v1684_v44 }
 0x203   :  { %1630 = vmatmul.mubr.f32.vlgmr.msra.gmra.mrb[0].mxu1 %v1988_v14 }
 0x2d6   :  { %v1295_v0 = vpop.f32.mrb[0].mxu1 }
 0x2d7   :  { %v1720_v5 = vadd.f32 %v1295_v0, %v809_v63  ;;  %v1631_v6 = vpop.f32.mrb[1].mxu1 }
 0x2d9   :  { %v1312_v18 = vrot.slane %v1720_v5, %v1311_v59  ;;  %v1302_v7 = vrot.slane %v1720_v5, %v1301_v60  ;;  %v1332_v17 = vrot.slane %v1720_v5, %v1331_v61  ;;  %v1322_v8 = vrot.slane %v1720_v5, %v1321_v62 }
 0x2da   :  { %v1352_v9 = vrot.slane %v1720_v5, %v1351_v1  ;;  %v1342_v10 = vrot.slane %v1720_v5, %v1341_v2  ;;  %v1372_v11 = vrot.slane %v1720_v5, %v1371_v3  ;;  %v1362_v21 = vrot.slane %v1720_v5, %v1361_v4 }
 0x2db   :  { %1315 = vrot.lane.b32.xlu0 %v1312_v18, %s1821_s4  ;;  %1305 = vrot.lane.b32.xlu1 %v1302_v7, %s1821_s4 }
 0x2df   :  { %1335 = vrot.lane.b32.xlu0 %v1332_v17, %s1821_s4  ;;  %1325 = vrot.lane.b32.xlu1 %v1322_v8, %s1821_s4 }
 0x2e3   :  { %1355 = vrot.lane.b32.xlu0 %v1352_v9, %s1821_s4  ;;  %1345 = vrot.lane.b32.xlu1 %v1342_v10, %s1821_s4 }
 0x2e7   :  { %1375 = vrot.lane.b32.xlu0 %v1372_v11, %s1821_s4  ;;  %1365 = vrot.lane.b32.xlu1 %v1362_v21, %s1821_s4 }
 0x34d   :  { %v1316_v12 = vpop.permute.xlu0 %1315  ;;  %v1306_v13 = vpop.permute.xlu1 %1305 }
 0x34e   :  { %1318 = vst.msk [vmem:[#allocation2 + $0x8] sm:$0xff] %vm1307_vm3, %v1316_v12  ;;  %1308 = vst.msk [vmem:[#allocation2] sm:$0xff] %vm1307_vm3, %v1306_v13 }
 0x351   :  { %v1336_v14 = vpop.permute.xlu0 %1335  ;;  %v1326_v15 = vpop.permute.xlu1 %1325 }
 0x352   :  { %1338 = vst.msk [vmem:[#allocation2 + $0x18] sm:$0xff] %vm1307_vm3, %v1336_v14  ;;  %1328 = vst.msk [vmem:[#allocation2 + $0x10] sm:$0xff] %vm1307_vm3, %v1326_v15 }
 0x355   :  { %v1356_v19 = vpop.permute.xlu0 %1355  ;;  %v1346_v20 = vpop.permute.xlu1 %1345 }
 0x356   :  { %1358 = vst.msk [vmem:[#allocation2 + $0x28] sm:$0xff] %vm1307_vm3, %v1356_v19  ;;  %1348 = vst.msk [vmem:[#allocation2 + $0x20] sm:$0xff] %vm1307_vm3, %v1346_v20 }
 0x359   :  { %v1376_v22 = vpop.permute.xlu0 %1375  ;;  %v1366_v23 = vpop.permute.xlu1 %1365 }
 0x35a   :  { %1378 = vst.msk [vmem:[#allocation2 + $0x38] sm:$0xff] %vm1307_vm3, %v1376_v22  ;;  %1368 = vst.msk [vmem:[#allocation2 + $0x30] sm:$0xff] %vm1307_vm3, %v1366_v23 }
 0x35b   :  { %1804 = shalt.err (!%p1801_p4)
}
 0x35c   :  { %s1805_s9 = scalar_lea.hbm %s2042_s6, 1024 }
 0x35d   :  { %p1806_p5 = scmp.ne.s32.totalorder %s2042_s6, %s1805_s9  ;;  %p1809_p6 = scmp.lt.u32.totalorder %s1805_s9, %s2042_s6 }
 0x35f   :  { %p1811_p7 = pnand %p1809_p6, %p1806_p5 }
 0x361   :  { %1814 = shalt.err (!%p1811_p7)
}
 0x362   :  { %s1823_s14 = smov 128   ;;  %s1824_s15 = smov 8  }
 0x363   :  { %1390 = dma.vmem_to_hbm [thread:$0]  %s1385_s29, 1024, %s2042_s6, [#allocation3], %s1823_s14, %s1823_s14, %s1824_s15  }
 0x364   :  { %1815 = dma.done.wait [#allocation3], 1024  }
 0x365   :  { %1816 = vsyncadd [#allocation3], 4294966272 }
 0x366   :  { %1394 = vsyncpa [#allocation3], 1 }

</bundles_post_ra>
